<compile_context>
chip_gen: v7x
topology: tpu7x:2x2x1
jax: 0.10.0
libtpu: 0.0.40
codegen_flags: <defaults>
</compile_context>

<pallas_src>
import jax
import jax.numpy as jnp
from jax.experimental import pallas as pl
from jax.experimental.pallas import tpu as pltpu


def avaliador_kernel(
    emb_ref,      # (S, TB, E) f32  time-major embedded text (unpadded)
    numeros_ref,  # (TB, N)    f32
    convw_ref,    # (3E, H)    f32  conv weight, taps stacked along rows
    convb_ref,    # (1, H)     f32
    wih_ref,      # (H, 4H)    f32  (= W_ih.T, PyTorch gate order i,f,g,o)
    whh_ref,      # (H, 4H)    f32  (= W_hh.T)
    blstm_ref,    # (1, 4H)    f32  (= b_ih + b_hh)
    watt_ref,     # (1, H)     f32
    batt_ref,     # (1, 1)     f32
    wn_ref,       # (N, C)     f32  (= fc_numeros.weight.T)
    bn_ref,       # (1, C)     f32
    wft_ref,      # (H, C)     f32  (= fc_final.weight.T rows for contexto)
    wfn_ref,      # (C, C)     f32  (= fc_final.weight.T rows for num_ctx)
    bf_ref,       # (1, C)     f32
    out_ref,      # (TB, C)    f32  softmax probabilities
    hn_ref,       # (1, TB, H) f32  final LSTM hidden state
    cn_ref,       # (1, TB, H) f32  final LSTM cell state
    gx_scr,       # (S, TB, 4H) VMEM scratch: hoisted input-gate projections
    lstm_scr,     # (S, TB, H)  VMEM scratch: lstm outputs, time-major
):
    S, TB, E = emb_ref.shape
    H = convb_ref.shape[-1]

    # ---- Conv1d(kernel=3, padding=1) + ReLU as ONE fused im2col matmul -----
    x = emb_ref[...]                                       # (S, TB, E)
    zrow = jnp.zeros((1, TB, E), jnp.float32)
    x_prev = jnp.concatenate([zrow, x[:-1]], axis=0)       # x[t-1], 0 at t=0
    x_next = jnp.concatenate([x[1:], zrow], axis=0)        # x[t+1], 0 at t=S-1
    slab = jnp.concatenate([x_prev, x, x_next], axis=-1)   # (S, TB, 3E)
    slab2d = slab.reshape(S * TB, 3 * E)

    conv = jnp.dot(slab2d, convw_ref[...],
                   preferred_element_type=jnp.float32) + convb_ref[...]
    conv = jnp.maximum(conv, 0.0)                          # (S*TB, H)

    # ---- Hoisted LSTM input projection: one batched matmul -----------------
    gx = jnp.dot(conv, wih_ref[...],
                 preferred_element_type=jnp.float32) + blstm_ref[...]
    gx_scr[...] = gx.reshape(S, TB, 4 * H)                 # time-major gates_x

    # ---- LSTM recurrence (batch_first, single layer, zero init state) ------
    # Only the recurrent term h @ W_hh stays in the loop; with H tiny it is
    # computed as VPU broadcast-FMAs (no MXU round-trip on the serial chain).
    whh = whh_ref[...]                                     # (H, 4H)
    whh_rows = [jnp.broadcast_to(whh[j:j + 1, :], (TB, 4 * H))
                for j in range(H)]                         # hoisted broadcasts

    def lstm_step(t, carry):
        h, c = carry                                       # (TB, H) each
        gates = gx_scr[t]                                  # (TB, 4H)
        for j in range(H):                                 # static tiny H
            gates = gates + h[:, j:j + 1] * whh_rows[j]
        sg = jax.nn.sigmoid(gates)                         # one EUP pass on slab
        i_g = sg[:, 0:H]
        f_g = sg[:, H:2 * H]
        o_g = sg[:, 3 * H:4 * H]
        g_g = jnp.tanh(gates[:, 2 * H:3 * H])
        c = f_g * c + i_g * g_g
        h = o_g * jnp.tanh(c)
        lstm_scr[t] = h
        return (h, c)

    h0 = jnp.zeros((TB, H), jnp.float32)
    c0 = jnp.zeros((TB, H), jnp.float32)
    h_n, c_n = jax.lax.fori_loop(0, S, lstm_step, (h0, c0))

    # ---- Attention pooling over the sequence axis ---------------------------
    # scores kept as (S, TB, 1): softmax max/sum and the weighted sum are
    # across-vreg VPU ops (no relayout, no sublane reduce).
    lstm_out = lstm_scr[...]                               # (S, TB, H)
    att_w = watt_ref[...].reshape(1, 1, H)
    scores = (jnp.sum(lstm_out * att_w, axis=-1, keepdims=True)
              + batt_ref[...].reshape(1, 1, 1))            # (S, TB, 1)
    scores = scores - jnp.max(scores, axis=0, keepdims=True)
    e = jnp.exp(scores)
    attn = e / jnp.sum(e, axis=0, keepdims=True)           # (S, TB, 1)
    contexto = jnp.sum(lstm_out * attn, axis=0)            # (TB, H)

    # ---- Numeric branch: ReLU(Linear) ---------------------------------------
    num_ctx = jnp.maximum(
        jnp.dot(numeros_ref[...], wn_ref[...],
                preferred_element_type=jnp.float32) + bn_ref[...], 0.0)  # (TB, C)

    # ---- fc_final (pre-split weights, no lane concat) -> Softmax ------------
    logits = (jnp.dot(contexto, wft_ref[...], preferred_element_type=jnp.float32)
              + jnp.dot(num_ctx, wfn_ref[...], preferred_element_type=jnp.float32)
              + bf_ref[...])                               # (TB, C)
    logits = logits - jnp.max(logits, axis=1, keepdims=True)
    ez = jnp.exp(logits)
    out_ref[...] = ez / jnp.sum(ez, axis=1, keepdims=True)

    hn_ref[0] = h_n
    cn_ref[0] = c_n


def avaliador_forward(params, texto, numeros):
    emb_tbl = params["embedding"]
    B, S = texto.shape
    E = emb_tbl.shape[1]
    H = params["conv_b"].shape[0]
    C = params["b_num"].shape[0]
    N = numeros.shape[-1]

    # TODO(synk): at production sizes fuse the embedding gather into the kernel
    # (PrefetchScalarGridSpec + Element-indexed rows) instead of gathering here.
    emb_tm = emb_tbl[texto.T].astype(jnp.float32)          # (S, B, E) time-major

    convw = jnp.transpose(params["conv_w"], (2, 1, 0)).reshape(3 * E, H)  # (3E, H)
    convb = params["conv_b"].reshape(1, H)
    wih = params["w_ih"].T                                 # (H, 4H)
    whh = params["w_hh"].T                                 # (H, 4H)
    blstm = (params["b_ih"] + params["b_hh"]).reshape(1, 4 * H)
    watt = params["w_att"]                                 # (1, H)
    batt = params["b_att"].reshape(1, 1)
    wn = params["w_num"].T                                 # (N, C)
    bn = params["b_num"].reshape(1, C)
    wf = params["w_fin"].T                                 # (2C, C); model needs H == C
    wf_txt = wf[:H]                                        # (H, C)
    wf_num = wf[H:]                                        # (C, C)
    bf = params["b_fin"].reshape(1, C)

    # Batch tile: full batch at toy sizes; multiples of 8 tile through the grid
    # (parallel axis -> both v7x TensorCores get work, VMEM stays bounded).
    TB = 8 if (B % 8 == 0) else B
    grid = (B // TB,)

    def full(shape):
        return pl.BlockSpec(shape, lambda i, _s=shape: tuple(0 for _ in _s))

    in_specs = [
        pl.BlockSpec((S, TB, E), lambda i: (0, i, 0)),     # emb (time-major)
        pl.BlockSpec((TB, N), lambda i: (i, 0)),           # numeros
        full((3 * E, H)),                                  # convw
        full((1, H)),                                      # convb
        full((H, 4 * H)),                                  # wih
        full((H, 4 * H)),                                  # whh
        full((1, 4 * H)),                                  # blstm
        full((1, H)),                                      # watt
        full((1, 1)),                                      # batt
        full((N, C)),                                      # wn
        full((1, C)),                                      # bn
        full((H, C)),                                      # wf_txt
        full((C, C)),                                      # wf_num
        full((1, C)),                                      # bf
    ]
    out_specs = (
        pl.BlockSpec((TB, C), lambda i: (i, 0)),
        pl.BlockSpec((1, TB, H), lambda i: (0, i, 0)),
        pl.BlockSpec((1, TB, H), lambda i: (0, i, 0)),
    )
    out_shape = (
        jax.ShapeDtypeStruct((B, C), jnp.float32),
        jax.ShapeDtypeStruct((1, B, H), jnp.float32),
        jax.ShapeDtypeStruct((1, B, H), jnp.float32),
    )

    fn = pl.pallas_call(
        avaliador_kernel,
        out_shape=out_shape,
        grid=grid,
        in_specs=in_specs,
        out_specs=out_specs,
        scratch_shapes=[pltpu.VMEM((S, TB, 4 * H), jnp.float32),
                        pltpu.VMEM((S, TB, H), jnp.float32)],
        compiler_params=pltpu.CompilerParams(
            dimension_semantics=("parallel",)),
    )
    return fn(emb_tm, numeros.astype(jnp.float32), convw, convb, wih, whh,
              blstm, watt, batt, wn, bn, wf_txt, wf_num, bf)


def reference_forward(params, texto, numeros):
    # pure-JAX reference mirroring the PyTorch forward, for validation
    emb = params["embedding"][texto]
    B, S, E = emb.shape
    H = params["conv_b"].shape[0]
    x = jnp.pad(emb, ((0, 0), (1, 1), (0, 0)))
    conv = params["conv_b"][None, None, :]
    for k in range(3):
        conv = conv + jnp.einsum("bse,he->bsh", x[:, k:k + S, :],
                                 params["conv_w"][:, :, k])
    conv = jax.nn.relu(conv)                               # (B, S, H)

    wih, whh = params["w_ih"], params["w_hh"]
    b = params["b_ih"] + params["b_hh"]
    h = jnp.zeros((B, H), jnp.float32)
    c = jnp.zeros((B, H), jnp.float32)
    outs = []
    for t in range(S):
        gates = conv[:, t, :] @ wih.T + h @ whh.T + b
        i = jax.nn.sigmoid(gates[:, :H])
        f = jax.nn.sigmoid(gates[:, H:2 * H])
        g = jnp.tanh(gates[:, 2 * H:3 * H])
        o = jax.nn.sigmoid(gates[:, 3 * H:])
        c = f * c + i * g
        h = o * jnp.tanh(c)
        outs.append(h)
    lstm_out = jnp.stack(outs, axis=1)                     # (B, S, H)

    scores = lstm_out @ params["w_att"].T + params["b_att"]      # (B, S, 1)
    attn = jax.nn.softmax(scores, axis=1)
    contexto = jnp.sum(lstm_out * attn, axis=1)                  # (B, H)
    num_ctx = jax.nn.relu(numeros @ params["w_num"].T + params["b_num"])
    combined = jnp.concatenate([contexto, num_ctx], axis=1)
    logits = combined @ params["w_fin"].T + params["b_fin"]
    out = jax.nn.softmax(logits, axis=1)
    return out, h[None], c[None]


if __name__ == "__main__":
    # hidden_dim must equal num_classes for the original forward to be shape-valid
    V, E, H, C, N = 32, 16, 2, 2, 18
    B, S = 2, 8

    key = jax.random.PRNGKey(0)
    keys = jax.random.split(key, 16)

    def rnd(k, shape, scale=0.2):
        return (scale * jax.random.normal(k, shape)).astype(jnp.float32)

    params = {
        "embedding": rnd(keys[0], (V, E)),
        "conv_w": rnd(keys[1], (H, E, 3)),     # Conv1d.weight (out, in, k)
        "conv_b": rnd(keys[2], (H,)),
        "w_ih": rnd(keys[3], (4 * H, H)),      # LSTM weight_ih_l0
        "w_hh": rnd(keys[4], (4 * H, H)),      # LSTM weight_hh_l0
        "b_ih": rnd(keys[5], (4 * H,)),
        "b_hh": rnd(keys[6], (4 * H,)),
        "w_att": rnd(keys[7], (1, H)),         # attention Linear
        "b_att": rnd(keys[8], (1,)),
        "w_num": rnd(keys[9], (C, N)),         # fc_numeros
        "b_num": rnd(keys[10], (C,)),
        "w_fin": rnd(keys[11], (C, 2 * C)),    # fc_final
        "b_fin": rnd(keys[12], (C,)),
        # fc_texto exists in __init__ but is unused in forward -> omitted
    }
    texto = jax.random.randint(keys[13], (B, S), 0, V, dtype=jnp.int32)
    numeros = rnd(keys[14], (B, N), scale=1.0)

    out, h_n, c_n = avaliador_forward(params, texto, numeros)
    jax.block_until_ready(out)

    ref_out, ref_h, ref_c = reference_forward(params, texto, numeros)
    assert jnp.allclose(out, ref_out, atol=2e-4, rtol=2e-4), (out, ref_out)
    assert jnp.allclose(h_n, ref_h, atol=2e-4, rtol=2e-4)
    assert jnp.allclose(c_n, ref_c, atol=2e-4, rtol=2e-4)

    print("KERNEL_OK")
</pallas_src>

<mosaic_0001>
module attributes {stable_mosaic.version = 11 : i64} {
  func.func @avaliador_kernel(%arg0: i32, %arg1: memref<8x2x16xf32, #tpu.memory_space<vmem>>, %arg2: memref<2x18xf32, #tpu.memory_space<vmem>>, %arg3: memref<48x2xf32, #tpu.memory_space<vmem>>, %arg4: memref<1x2xf32, #tpu.memory_space<vmem>>, %arg5: memref<2x8xf32, #tpu.memory_space<vmem>>, %arg6: memref<2x8xf32, #tpu.memory_space<vmem>>, %arg7: memref<1x8xf32, #tpu.memory_space<vmem>>, %arg8: memref<1x2xf32, #tpu.memory_space<vmem>>, %arg9: memref<1x1xf32, #tpu.memory_space<vmem>>, %arg10: memref<18x2xf32, #tpu.memory_space<vmem>>, %arg11: memref<1x2xf32, #tpu.memory_space<vmem>>, %arg12: memref<2x2xf32, #tpu.memory_space<vmem>>, %arg13: memref<2x2xf32, #tpu.memory_space<vmem>>, %arg14: memref<1x2xf32, #tpu.memory_space<vmem>>, %arg15: memref<2x2xf32, #tpu.memory_space<vmem>>, %arg16: memref<1x2x2xf32, #tpu.memory_space<vmem>>, %arg17: memref<1x2x2xf32, #tpu.memory_space<vmem>>, %arg18: memref<8x2x8xf32, #tpu.memory_space<vmem>>, %arg19: memref<8x2x2xf32, #tpu.memory_space<vmem>>) attributes {dimension_semantics = [#tpu.dimension_semantics<parallel>], iteration_bounds = array<i64: 1>, scalar_prefetch = 0 : i64, scratch_operands = 2 : i64, tpu.core_type = #tpu.core_type<tc>, window_params = [{transform_indices = @transform_0, window_bounds = array<i64: 8, 2, 16>}, {transform_indices = @transform_1, window_bounds = array<i64: 2, 18>}, {pipeline_mode = #tpu.pipeline_mode<synchronous>, transform_indices = @transform_2, window_bounds = array<i64: 48, 2>}, {pipeline_mode = #tpu.pipeline_mode<synchronous>, transform_indices = @transform_3, window_bounds = array<i64: 1, 2>}, {pipeline_mode = #tpu.pipeline_mode<synchronous>, transform_indices = @transform_4, window_bounds = array<i64: 2, 8>}, {pipeline_mode = #tpu.pipeline_mode<synchronous>, transform_indices = @transform_5, window_bounds = array<i64: 2, 8>}, {pipeline_mode = #tpu.pipeline_mode<synchronous>, transform_indices = @transform_6, window_bounds = array<i64: 1, 8>}, {pipeline_mode = #tpu.pipeline_mode<synchronous>, transform_indices = @transform_7, window_bounds = array<i64: 1, 2>}, {pipeline_mode = #tpu.pipeline_mode<synchronous>, transform_indices = @transform_8, window_bounds = array<i64: 1, 1>}, {pipeline_mode = #tpu.pipeline_mode<synchronous>, transform_indices = @transform_9, window_bounds = array<i64: 18, 2>}, {pipeline_mode = #tpu.pipeline_mode<synchronous>, transform_indices = @transform_10, window_bounds = array<i64: 1, 2>}, {pipeline_mode = #tpu.pipeline_mode<synchronous>, transform_indices = @transform_11, window_bounds = array<i64: 2, 2>}, {pipeline_mode = #tpu.pipeline_mode<synchronous>, transform_indices = @transform_12, window_bounds = array<i64: 2, 2>}, {pipeline_mode = #tpu.pipeline_mode<synchronous>, transform_indices = @transform_13, window_bounds = array<i64: 1, 2>}, {transform_indices = @transform_14, window_bounds = array<i64: 2, 2>}, {transform_indices = @transform_15, window_bounds = array<i64: 1, 2, 2>}, {transform_indices = @transform_16, window_bounds = array<i64: 1, 2, 2>}]} {
    %c0 = arith.constant 0 : index
    %c0_0 = arith.constant 0 : index
    %c0_1 = arith.constant 0 : index
    %0 = vector.load %arg1[%c0, %c0_0, %c0_1] : memref<8x2x16xf32, #tpu.memory_space<vmem>>, vector<8x2x16xf32>
    %cst = arith.constant 0.000000e+00 : f32
    %1 = vector.broadcast %cst : f32 to vector<1x2x16xf32>
    %2 = vector.extract_strided_slice %0 {offsets = [0, 0, 0], sizes = [7, 2, 16], strides = [1, 1, 1]} : vector<8x2x16xf32> to vector<7x2x16xf32>
    %3 = tpu.concatenate %1, %2 in 0 : vector<1x2x16xf32>, vector<7x2x16xf32> -> vector<8x2x16xf32>
    %4 = vector.extract_strided_slice %0 {offsets = [1, 0, 0], sizes = [7, 2, 16], strides = [1, 1, 1]} : vector<8x2x16xf32> to vector<7x2x16xf32>
    %5 = tpu.concatenate %4, %1 in 0 : vector<7x2x16xf32>, vector<1x2x16xf32> -> vector<8x2x16xf32>
    %6 = tpu.concatenate %3, %0, %5 in 2 : vector<8x2x16xf32>, vector<8x2x16xf32>, vector<8x2x16xf32> -> vector<8x2x48xf32>
    %7 = vector.shape_cast %6 : vector<8x2x48xf32> to vector<16x48xf32>
    %c0_2 = arith.constant 0 : index
    %c0_3 = arith.constant 0 : index
    %8 = vector.load %arg3[%c0_2, %c0_3] : memref<48x2xf32, #tpu.memory_space<vmem>>, vector<48x2xf32>
    %cst_4 = arith.constant dense<0.000000e+00> : vector<16x2xf32>
    %9 = tpu.matmul %7, %8, %cst_4 {dimension_numbers = #tpu.dot_dimension_numbers<[1], [0], [0], [1], [0, 0, 1, 1], [], []>} : vector<16x48xf32>, vector<48x2xf32>, vector<16x2xf32> -> vector<16x2xf32>
    %c0_5 = arith.constant 0 : index
    %c0_6 = arith.constant 0 : index
    %10 = vector.load %arg4[%c0_5, %c0_6] : memref<1x2xf32, #tpu.memory_space<vmem>>, vector<1x2xf32>
    %11 = vector.broadcast %10 : vector<1x2xf32> to vector<16x2xf32>
    %12 = arith.addf %9, %11 : vector<16x2xf32>
    %cst_7 = arith.constant 0.000000e+00 : f32
    %13 = vector.broadcast %cst_7 : f32 to vector<16x2xf32>
    %14 = arith.maximumf %12, %13 : vector<16x2xf32>
    %c0_8 = arith.constant 0 : index
    %c0_9 = arith.constant 0 : index
    %15 = vector.load %arg5[%c0_8, %c0_9] : memref<2x8xf32, #tpu.memory_space<vmem>>, vector<2x8xf32>
    %cst_10 = arith.constant dense<0.000000e+00> : vector<16x8xf32>
    %16 = tpu.matmul %14, %15, %cst_10 {dimension_numbers = #tpu.dot_dimension_numbers<[1], [0], [0], [1], [0, 0, 1, 1], [], []>} : vector<16x2xf32>, vector<2x8xf32>, vector<16x8xf32> -> vector<16x8xf32>
    %c0_11 = arith.constant 0 : index
    %c0_12 = arith.constant 0 : index
    %17 = vector.load %arg7[%c0_11, %c0_12] : memref<1x8xf32, #tpu.memory_space<vmem>>, vector<1x8xf32>
    %18 = vector.broadcast %17 : vector<1x8xf32> to vector<16x8xf32>
    %19 = arith.addf %16, %18 : vector<16x8xf32>
    %20 = vector.shape_cast %19 : vector<16x8xf32> to vector<8x2x8xf32>
    %c0_13 = arith.constant 0 : index
    %c0_14 = arith.constant 0 : index
    %c0_15 = arith.constant 0 : index
    %21 = vector.load %arg18[%c0_13, %c0_14, %c0_15] : memref<8x2x8xf32, #tpu.memory_space<vmem>>, vector<8x2x8xf32>
    tpu.vector_store %arg18[%c0_13, %c0_14, %c0_15], %20 {strides = array<i32>} : memref<8x2x8xf32, #tpu.memory_space<vmem>>, vector<8x2x8xf32>,
    %c0_16 = arith.constant 0 : index
    %c0_17 = arith.constant 0 : index
    %22 = vector.load %arg6[%c0_16, %c0_17] : memref<2x8xf32, #tpu.memory_space<vmem>>, vector<2x8xf32>
    %23 = vector.extract_strided_slice %22 {offsets = [0, 0], sizes = [1, 8], strides = [1, 1]} : vector<2x8xf32> to vector<1x8xf32>
    %24 = vector.shape_cast %23 : vector<1x8xf32> to vector<1x8xf32>
    %25 = vector.broadcast %24 : vector<1x8xf32> to vector<2x8xf32>
    %26 = vector.extract_strided_slice %22 {offsets = [1, 0], sizes = [1, 8], strides = [1, 1]} : vector<2x8xf32> to vector<1x8xf32>
    %27 = vector.shape_cast %26 : vector<1x8xf32> to vector<1x8xf32>
    %28 = vector.broadcast %27 : vector<1x8xf32> to vector<2x8xf32>
    %cst_18 = arith.constant 0.000000e+00 : f32
    %29 = vector.broadcast %cst_18 : f32 to vector<2x2xf32>
    %cst_19 = arith.constant 0.000000e+00 : f32
    %30 = vector.broadcast %cst_19 : f32 to vector<2x2xf32>
    %c0_i32 = arith.constant 0 : i32
    %c8_i32 = arith.constant 8 : i32
    %31 = arith.addi %c0_i32, %c8_i32 : i32
    %c1_i32 = arith.constant 1 : i32
    %32:2 = scf.for %arg20 = %c0_i32 to %31 step %c1_i32 iter_args(%arg21 = %29, %arg22 = %30) -> (vector<2x2xf32>, vector<2x2xf32>)  : i32 {
      %88 = arith.index_cast %arg20 : i32 to index
      %c0_58 = arith.constant 0 : index
      %c0_59 = arith.constant 0 : index
      %89 = vector.load %arg18[%88, %c0_58, %c0_59] : memref<8x2x8xf32, #tpu.memory_space<vmem>>, vector<1x2x8xf32>
      %90 = vector.shape_cast %89 : vector<1x2x8xf32> to vector<2x8xf32>
      %91 = vector.extract_strided_slice %arg21 {offsets = [0, 0], sizes = [2, 1], strides = [1, 1]} : vector<2x2xf32> to vector<2x1xf32>
      %92 = vector.broadcast %91 : vector<2x1xf32> to vector<2x8xf32>
      %93 = arith.mulf %92, %25 : vector<2x8xf32>
      %94 = arith.addf %90, %93 : vector<2x8xf32>
      %95 = vector.extract_strided_slice %arg21 {offsets = [0, 1], sizes = [2, 1], strides = [1, 1]} : vector<2x2xf32> to vector<2x1xf32>
      %96 = vector.broadcast %95 : vector<2x1xf32> to vector<2x8xf32>
      %97 = arith.mulf %96, %28 : vector<2x8xf32>
      %98 = arith.addf %94, %97 : vector<2x8xf32>
      %99 = arith.negf %98 : vector<2x8xf32>
      %100 = math.exp %99 : vector<2x8xf32>
      %cst_60 = arith.constant 1.000000e+00 : f32
      %101 = vector.broadcast %cst_60 : f32 to vector<2x8xf32>
      %102 = arith.addf %101, %100 : vector<2x8xf32>
      %103 = arith.divf %101, %102 : vector<2x8xf32>
      %104 = vector.extract_strided_slice %103 {offsets = [0, 0], sizes = [2, 2], strides = [1, 1]} : vector<2x8xf32> to vector<2x2xf32>
      %105 = vector.extract_strided_slice %103 {offsets = [0, 2], sizes = [2, 2], strides = [1, 1]} : vector<2x8xf32> to vector<2x2xf32>
      %106 = vector.extract_strided_slice %103 {offsets = [0, 6], sizes = [2, 2], strides = [1, 1]} : vector<2x8xf32> to vector<2x2xf32>
      %107 = vector.extract_strided_slice %98 {offsets = [0, 4], sizes = [2, 2], strides = [1, 1]} : vector<2x8xf32> to vector<2x2xf32>
      %108 = math.tanh %107 : vector<2x2xf32>
      %109 = arith.mulf %105, %arg22 : vector<2x2xf32>
      %110 = arith.mulf %104, %108 : vector<2x2xf32>
      %111 = arith.addf %109, %110 : vector<2x2xf32>
      %112 = math.tanh %111 : vector<2x2xf32>
      %113 = arith.mulf %106, %112 : vector<2x2xf32>
      %114 = arith.index_cast %arg20 : i32 to index
      %c0_61 = arith.constant 0 : index
      %c0_62 = arith.constant 0 : index
      %115 = vector.load %arg19[%114, %c0_61, %c0_62] : memref<8x2x2xf32, #tpu.memory_space<vmem>>, vector<1x2x2xf32>
      %116 = vector.shape_cast %115 : vector<1x2x2xf32> to vector<2x2xf32>
      %117 = vector.shape_cast %113 : vector<2x2xf32> to vector<1x2x2xf32>
      tpu.vector_store %arg19[%114, %c0_61, %c0_62], %117 {strides = array<i32>} : memref<8x2x2xf32, #tpu.memory_space<vmem>>, vector<1x2x2xf32>,
      scf.yield %113, %111 : vector<2x2xf32>, vector<2x2xf32>
    }
    %c8_i32_20 = arith.constant 8 : i32
    %c0_21 = arith.constant 0 : index
    %c0_22 = arith.constant 0 : index
    %c0_23 = arith.constant 0 : index
    %33 = vector.load %arg19[%c0_21, %c0_22, %c0_23] : memref<8x2x2xf32, #tpu.memory_space<vmem>>, vector<8x2x2xf32>
    %c0_24 = arith.constant 0 : index
    %c0_25 = arith.constant 0 : index
    %34 = vector.load %arg8[%c0_24, %c0_25] : memref<1x2xf32, #tpu.memory_space<vmem>>, vector<1x2xf32>
    %35 = vector.shape_cast %34 : vector<1x2xf32> to vector<1x1x2xf32>
    %36 = vector.broadcast %35 : vector<1x1x2xf32> to vector<8x2x2xf32>
    %37 = arith.mulf %33, %36 : vector<8x2x2xf32>
    %cst_26 = arith.constant dense<0.000000e+00> : vector<8x2xf32>
    %38 = vector.multi_reduction <add>, %37, %cst_26 [2] : vector<8x2x2xf32> to vector<8x2xf32>
    %39 = vector.shape_cast %38 : vector<8x2xf32> to vector<8x2x1xf32>
    %c0_27 = arith.constant 0 : index
    %c0_28 = arith.constant 0 : index
    %40 = vector.load %arg9[%c0_27, %c0_28] : memref<1x1xf32, #tpu.memory_space<vmem>>, vector<1x1xf32>
    %41 = vector.shape_cast %40 : vector<1x1xf32> to vector<1x1x1xf32>
    %42 = vector.broadcast %41 : vector<1x1x1xf32> to vector<8x2x1xf32>
    %43 = arith.addf %39, %42 : vector<8x2x1xf32>
    %cst_29 = arith.constant dense<0xFF800000> : vector<2x1xf32>
    %44 = vector.multi_reduction <maximumf>, %43, %cst_29 [0] : vector<8x2x1xf32> to vector<2x1xf32>
    %45 = vector.shape_cast %44 : vector<2x1xf32> to vector<1x2x1xf32>
    %46 = vector.broadcast %45 : vector<1x2x1xf32> to vector<8x2x1xf32>
    %47 = arith.subf %43, %46 : vector<8x2x1xf32>
    %48 = math.exp %47 : vector<8x2x1xf32>
    %cst_30 = arith.constant dense<0.000000e+00> : vector<2x1xf32>
    %49 = vector.multi_reduction <add>, %48, %cst_30 [0] : vector<8x2x1xf32> to vector<2x1xf32>
    %50 = vector.shape_cast %49 : vector<2x1xf32> to vector<1x2x1xf32>
    %51 = vector.broadcast %50 : vector<1x2x1xf32> to vector<8x2x1xf32>
    %52 = arith.divf %48, %51 : vector<8x2x1xf32>
    %53 = vector.broadcast %52 : vector<8x2x1xf32> to vector<8x2x2xf32>
    %54 = arith.mulf %33, %53 : vector<8x2x2xf32>
    %cst_31 = arith.constant dense<0.000000e+00> : vector<2x2xf32>
    %55 = vector.multi_reduction <add>, %54, %cst_31 [0] : vector<8x2x2xf32> to vector<2x2xf32>
    %c0_32 = arith.constant 0 : index
    %c0_33 = arith.constant 0 : index
    %56 = vector.load %arg2[%c0_32, %c0_33] : memref<2x18xf32, #tpu.memory_space<vmem>>, vector<2x18xf32>
    %c0_34 = arith.constant 0 : index
    %c0_35 = arith.constant 0 : index
    %57 = vector.load %arg10[%c0_34, %c0_35] : memref<18x2xf32, #tpu.memory_space<vmem>>, vector<18x2xf32>
    %cst_36 = arith.constant dense<0.000000e+00> : vector<2x2xf32>
    %58 = tpu.matmul %56, %57, %cst_36 {dimension_numbers = #tpu.dot_dimension_numbers<[1], [0], [0], [1], [0, 0, 1, 1], [], []>} : vector<2x18xf32>, vector<18x2xf32>, vector<2x2xf32> -> vector<2x2xf32>
    %c0_37 = arith.constant 0 : index
    %c0_38 = arith.constant 0 : index
    %59 = vector.load %arg11[%c0_37, %c0_38] : memref<1x2xf32, #tpu.memory_space<vmem>>, vector<1x2xf32>
    %60 = vector.broadcast %59 : vector<1x2xf32> to vector<2x2xf32>
    %61 = arith.addf %58, %60 : vector<2x2xf32>
    %cst_39 = arith.constant 0.000000e+00 : f32
    %62 = vector.broadcast %cst_39 : f32 to vector<2x2xf32>
    %63 = arith.maximumf %61, %62 : vector<2x2xf32>
    %c0_40 = arith.constant 0 : index
    %c0_41 = arith.constant 0 : index
    %64 = vector.load %arg12[%c0_40, %c0_41] : memref<2x2xf32, #tpu.memory_space<vmem>>, vector<2x2xf32>
    %cst_42 = arith.constant dense<0.000000e+00> : vector<2x2xf32>
    %65 = tpu.matmul %55, %64, %cst_42 {dimension_numbers = #tpu.dot_dimension_numbers<[1], [0], [0], [1], [0, 0, 1, 1], [], []>} : vector<2x2xf32>, vector<2x2xf32>, vector<2x2xf32> -> vector<2x2xf32>
    %c0_43 = arith.constant 0 : index
    %c0_44 = arith.constant 0 : index
    %66 = vector.load %arg13[%c0_43, %c0_44] : memref<2x2xf32, #tpu.memory_space<vmem>>, vector<2x2xf32>
    %cst_45 = arith.constant dense<0.000000e+00> : vector<2x2xf32>
    %67 = tpu.matmul %63, %66, %cst_45 {dimension_numbers = #tpu.dot_dimension_numbers<[1], [0], [0], [1], [0, 0, 1, 1], [], []>} : vector<2x2xf32>, vector<2x2xf32>, vector<2x2xf32> -> vector<2x2xf32>
    %68 = arith.addf %65, %67 : vector<2x2xf32>
    %c0_46 = arith.constant 0 : index
    %c0_47 = arith.constant 0 : index
    %69 = vector.load %arg14[%c0_46, %c0_47] : memref<1x2xf32, #tpu.memory_space<vmem>>, vector<1x2xf32>
    %70 = vector.broadcast %69 : vector<1x2xf32> to vector<2x2xf32>
    %71 = arith.addf %68, %70 : vector<2x2xf32>
    %cst_48 = arith.constant dense<0xFF800000> : vector<2xf32>
    %72 = vector.multi_reduction <maximumf>, %71, %cst_48 [1] : vector<2x2xf32> to vector<2xf32>
    %73 = vector.shape_cast %72 : vector<2xf32> to vector<2x1xf32>
    %74 = vector.broadcast %73 : vector<2x1xf32> to vector<2x2xf32>
    %75 = arith.subf %71, %74 : vector<2x2xf32>
    %76 = math.exp %75 : vector<2x2xf32>
    %cst_49 = arith.constant dense<0.000000e+00> : vector<2xf32>
    %77 = vector.multi_reduction <add>, %76, %cst_49 [1] : vector<2x2xf32> to vector<2xf32>
    %78 = vector.shape_cast %77 : vector<2xf32> to vector<2x1xf32>
    %79 = vector.broadcast %78 : vector<2x1xf32> to vector<2x2xf32>
    %80 = arith.divf %76, %79 : vector<2x2xf32>
    %c0_50 = arith.constant 0 : index
    %c0_51 = arith.constant 0 : index
    %81 = vector.load %arg15[%c0_50, %c0_51] : memref<2x2xf32, #tpu.memory_space<vmem>>, vector<2x2xf32>
    tpu.vector_store %arg15[%c0_50, %c0_51], %80 {strides = array<i32>} : memref<2x2xf32, #tpu.memory_space<vmem>>, vector<2x2xf32>,
    %c0_52 = arith.constant 0 : index
    %c0_53 = arith.constant 0 : index
    %c0_54 = arith.constant 0 : index
    %82 = vector.load %arg16[%c0_52, %c0_53, %c0_54] : memref<1x2x2xf32, #tpu.memory_space<vmem>>, vector<1x2x2xf32>
    %83 = vector.shape_cast %82 : vector<1x2x2xf32> to vector<2x2xf32>
    %84 = vector.shape_cast %32#0 : vector<2x2xf32> to vector<1x2x2xf32>
    tpu.vector_store %arg16[%c0_52, %c0_53, %c0_54], %84 {strides = array<i32>} : memref<1x2x2xf32, #tpu.memory_space<vmem>>, vector<1x2x2xf32>,
    %c0_55 = arith.constant 0 : index
    %c0_56 = arith.constant 0 : index
    %c0_57 = arith.constant 0 : index
    %85 = vector.load %arg17[%c0_55, %c0_56, %c0_57] : memref<1x2x2xf32, #tpu.memory_space<vmem>>, vector<1x2x2xf32>
    %86 = vector.shape_cast %85 : vector<1x2x2xf32> to vector<2x2xf32>
    %87 = vector.shape_cast %32#1 : vector<2x2xf32> to vector<1x2x2xf32>
    tpu.vector_store %arg17[%c0_55, %c0_56, %c0_57], %87 {strides = array<i32>} : memref<1x2x2xf32, #tpu.memory_space<vmem>>, vector<1x2x2xf32>,
    return
  }
  func.func @transform_0(%arg0: i32) -> (i32, i32, i32) {
    %c0_i32 = arith.constant 0 : i32
    %c0_i32_0 = arith.constant 0 : i32
    %c0_i32_1 = arith.constant 0 : i32
    return %c0_i32, %arg0, %c0_i32_0 : i32, i32, i32
  }
  func.func @transform_1(%arg0: i32) -> (i32, i32) {
    %c0_i32 = arith.constant 0 : i32
    %c0_i32_0 = arith.constant 0 : i32
    return %arg0, %c0_i32 : i32, i32
  }
  func.func @transform_2(%arg0: i32) -> (i32, i32) {
    %c0_i32 = arith.constant 0 : i32
    %c0_i32_0 = arith.constant 0 : i32
    %c0_i32_1 = arith.constant 0 : i32
    return %c0_i32, %c0_i32_0 : i32, i32
  }
  func.func @transform_3(%arg0: i32) -> (i32, i32) {
    %c0_i32 = arith.constant 0 : i32
    %c0_i32_0 = arith.constant 0 : i32
    %c0_i32_1 = arith.constant 0 : i32
    return %c0_i32, %c0_i32_0 : i32, i32
  }
  func.func @transform_4(%arg0: i32) -> (i32, i32) {
    %c0_i32 = arith.constant 0 : i32
    %c0_i32_0 = arith.constant 0 : i32
    %c0_i32_1 = arith.constant 0 : i32
    return %c0_i32, %c0_i32_0 : i32, i32
  }
  func.func @transform_5(%arg0: i32) -> (i32, i32) {
    %c0_i32 = arith.constant 0 : i32
    %c0_i32_0 = arith.constant 0 : i32
    %c0_i32_1 = arith.constant 0 : i32
    return %c0_i32, %c0_i32_0 : i32, i32
  }
  func.func @transform_6(%arg0: i32) -> (i32, i32) {
    %c0_i32 = arith.constant 0 : i32
    %c0_i32_0 = arith.constant 0 : i32
    %c0_i32_1 = arith.constant 0 : i32
    return %c0_i32, %c0_i32_0 : i32, i32
  }
  func.func @transform_7(%arg0: i32) -> (i32, i32) {
    %c0_i32 = arith.constant 0 : i32
    %c0_i32_0 = arith.constant 0 : i32
    %c0_i32_1 = arith.constant 0 : i32
    return %c0_i32, %c0_i32_0 : i32, i32
  }
  func.func @transform_8(%arg0: i32) -> (i32, i32) {
    %c0_i32 = arith.constant 0 : i32
    %c0_i32_0 = arith.constant 0 : i32
    %c0_i32_1 = arith.constant 0 : i32
    return %c0_i32, %c0_i32_0 : i32, i32
  }
  func.func @transform_9(%arg0: i32) -> (i32, i32) {
    %c0_i32 = arith.constant 0 : i32
    %c0_i32_0 = arith.constant 0 : i32
    %c0_i32_1 = arith.constant 0 : i32
    return %c0_i32, %c0_i32_0 : i32, i32
  }
  func.func @transform_10(%arg0: i32) -> (i32, i32) {
    %c0_i32 = arith.constant 0 : i32
    %c0_i32_0 = arith.constant 0 : i32
    %c0_i32_1 = arith.constant 0 : i32
    return %c0_i32, %c0_i32_0 : i32, i32
  }
  func.func @transform_11(%arg0: i32) -> (i32, i32) {
    %c0_i32 = arith.constant 0 : i32
    %c0_i32_0 = arith.constant 0 : i32
    %c0_i32_1 = arith.constant 0 : i32
    return %c0_i32, %c0_i32_0 : i32, i32
  }
  func.func @transform_12(%arg0: i32) -> (i32, i32) {
    %c0_i32 = arith.constant 0 : i32
    %c0_i32_0 = arith.constant 0 : i32
    %c0_i32_1 = arith.constant 0 : i32
    return %c0_i32, %c0_i32_0 : i32, i32
  }
  func.func @transform_13(%arg0: i32) -> (i32, i32) {
    %c0_i32 = arith.constant 0 : i32
    %c0_i32_0 = arith.constant 0 : i32
    %c0_i32_1 = arith.constant 0 : i32
    return %c0_i32, %c0_i32_0 : i32, i32
  }
  func.func @transform_14(%arg0: i32) -> (i32, i32) {
    %c0_i32 = arith.constant 0 : i32
    %c0_i32_0 = arith.constant 0 : i32
    return %arg0, %c0_i32 : i32, i32
  }
  func.func @transform_15(%arg0: i32) -> (i32, i32, i32) {
    %c0_i32 = arith.constant 0 : i32
    %c0_i32_0 = arith.constant 0 : i32
    %c0_i32_1 = arith.constant 0 : i32
    return %c0_i32, %arg0, %c0_i32_0 : i32, i32, i32
  }
  func.func @transform_16(%arg0: i32) -> (i32, i32, i32) {
    %c0_i32 = arith.constant 0 : i32
    %c0_i32_0 = arith.constant 0 : i32
    %c0_i32_1 = arith.constant 0 : i32
    return %c0_i32, %arg0, %c0_i32_0 : i32, i32, i32
  }
}

</mosaic_0001>

<bundles_post_ra>
// kernel: tpu_custom_call.1
= control target key start
LH: loop header
LB: loop body
LE: loop exit
PB: predicated region body
PF: predicated region fallthrough
CT: control target
= control target key end

     0   :  { %s1662_s0 = inlined_call_operand.vmem [shape: f32[8,2,16], index: 0, kind: input, shape index: {}]   ;;  %s1663_s1 = inlined_call_operand.vmem [shape: f32[2,18], index: 1, kind: input, shape index: {}]   ;;  %s1664_s2 = inlined_call_operand.vmem [shape: f32[48,2], index: 2, kind: input, shape index: {}]   ;;  %s1665_s3 = inlined_call_operand.vmem [shape: f32[1,2], index: 3, kind: input, shape index: {}]   ;;  %s1666_s4 = inlined_call_operand.vmem [shape: f32[2,8], index: 4, kind: input, shape index: {}]   ;;  %s1667_s5 = inlined_call_operand.vmem [shape: f32[2,8], index: 5, kind: input, shape index: {}]   ;;  %s1668_s6 = inlined_call_operand.vmem [shape: f32[1,8], index: 6, kind: input, shape index: {}]   ;;  %s1669_s7 = inlined_call_operand.vmem [shape: f32[1,2], index: 7, kind: input, shape index: {}]   ;;  %s1670_s8 = inlined_call_operand.<no memory space> [shape: f32[1,1], index: 8, kind: input, shape index: {}]   ;;  %s1671_s9 = inlined_call_operand.vmem [shape: f32[18,2], index: 9, kind: input, shape index: {}]   ;;  %s1672_s10 = inlined_call_operand.vmem [shape: f32[1,2], index: 10, kind: input, shape index: {}]   ;;  %s1673_s11 = inlined_call_operand.vmem [shape: f32[2,2], index: 11, kind: input, shape index: {}]   ;;  %s1674_s12 = inlined_call_operand.vmem [shape: f32[2,2], index: 12, kind: input, shape index: {}]   ;;  %s1675_s13 = inlined_call_operand.vmem [shape: f32[1,2], index: 13, kind: input, shape index: {}]   ;;  %s1676_s14 = inlined_call_operand.hbm [shape: f32[2,2], index: 14, kind: output, shape index: {0}]   ;;  %s1677_s15 = inlined_call_operand.hbm [shape: f32[1,2,2], index: 15, kind: output, shape index: {1}]   ;;  %s1678_s16 = inlined_call_operand.hbm [shape: f32[1,2,2], index: 16, kind: output, shape index: {2}]  }
   0x1   :  { %1680 = sst [smem:[#allocation12_spill]] %s1662_s0  ;;  %v22_v0 = vstv %s1670_s8 }
   0x2   :  { %23 = vst [vmem:[#allocation4] sm:$0x1] %v22_v0 }
   0x3   :  { %24 = vsyncpa [#allocation6], 0  ;;  %s1681_s25 = sld [smem:[#allocation12_spill]]  ;;  %s1266_s28 = smov 16  }
   0x9   :  { %v1375_v1 = vld [vmem:[%s1681_s25 + $0x4] sm:$0x3]  ;;  %v1380_v2 = vld [vmem:[%s1681_s25] sm:$0x3]  ;;  %v1387_v3 = vld [vmem:[%s1681_s25 + $0x6] sm:$0x3] }
   0xa   :  { %74 = vrot.lane.b32.xlu1 %v1375_v1, %s1266_s28  ;;  %70 = vrot.lane.b32.xlu0 %v1380_v2, %s1266_s28  ;;  %v1392_v4 = vld [vmem:[%s1681_s25 + $0x2] sm:$0x3] }
   0xb   :  { %25 = vsyncpa [#allocation8], 0  ;;  %v1399_v5 = vld [vmem:[%s1681_s25 + $0xa] sm:$0x3]  ;;  %v1404_v6 = vld [vmem:[%s1681_s25 + $0x8] sm:$0x3]  ;;  %v163_v7 = vlaneseq }
   0xc   :  { %v137_v8 = vld [vmem:[%s1664_s2] sm:$0xff]  ;;  %v138_v9 = vld [vmem:[%s1664_s2 + $0x8] sm:$0xff]  ;;  %v139_v17 = vld [vmem:[%s1664_s2 + $0x10] sm:$0xff]  ;;  %s1267_s23 = smov 32   ;;  %v1268_v25 = vmov 0.0   ;;  %vm119_vm0 = vcmask 130048  }
   0xd   :  { %v1081_v10 = vpack.c.bf16 %v138_v9, %v137_v8  ;;  %v61_v11 = vld [vmem:[%s1681_s25 + $0xe] sm:$0x3]  ;;  %v1420_v12 = vld [vmem:[%s1681_s25 + $0xc] sm:$0x3]  ;;  %v164_v13 = vshrl.u32 %v163_v7, 7  ;;  %v140_v18 = vld [vmem:[%s1664_s2 + $0x18] sm:$0xff] }
   0xe   :  { %76 = vrot.lane.b32.xlu1 %v1387_v3, %s1266_s28  ;;  %72 = vrot.lane.b32.xlu0 %v1392_v4, %s1266_s28  ;;  %v421_v14 = vld [vmem:[%s1667_s5] sm:$0x3]  ;;  %v1085_v19 = vpack.c.bf16 %v140_v18, %v139_v17  ;;  %v142_v23 = vld [vmem:[%s1664_s2 + $0x28] sm:$0xff]  ;;  %v1269_v34 = vmov 1983009808   ;;  %vm128_vm1 = vcmask 261120  }
   0xf   :  { %1082 = vmatprep.subr.bf16.mxu0 %v1081_v10  ;;  %v424_v15 = vsub.s32 0, %v164_v13  ;;  %v428_v16 = vsub.s32 1, %v164_v13  ;;  %v141_v22 = vld [vmem:[%s1664_s2 + $0x20] sm:$0xff]  ;;  %v161_v35 = vunpack.c.l.s4 %v1269_v34  ;;  %vm192_vm2 = vcmask 392192  }
  0x10   :  { %1084 = vmatpush3.bf16.msra.mxu0 %v1081_v10  ;;  %v1089_v24 = vpack.c.bf16 %v142_v23, %v141_v22  ;;  %v274_v9 = vld [vmem:[%s1666_s4] sm:$0x3]  ;;  %vm289_vm3 = vcmask 1041408   ;;  %vm282_vm4 = vcmask 15360   ;;  %vm412_vm5 = vcmask 58368  }
  0x11   :  { %v1432_v20 = vrot.slane %v421_v14, %v424_v15  ;;  %v1434_v21 = vrot.slane %v421_v14, %v428_v16  ;;  %1086 = vmatprep.subr.bf16.mxu0 %v1085_v19  ;;  %v162_v40 = vunpack.c.0.s8 %v161_v35  ;;  %1057 = vmatprep.subr.msk.mxu1 %vm289_vm3, %v274_v9  ;;  %v1007_v16 = vld [vmem:[%s1668_s6] ss:$0 sm:$0xff]  ;;  %v1254_v34 = vmov 0.0  }
  0x12   :  { %80 = vrot.lane.b32.xlu1 %v1399_v5, %s1266_s28  ;;  %78 = vrot.lane.b32.xlu0 %v1404_v6, %s1266_s28  ;;  %v1258_v35 = vmov 0.0  }
  0x13   :  { %v165_v48 = vsub.s32 %v162_v40, %v164_v13  ;;  %1058 = vmatpush3.msk.msra.mxu1 %vm289_vm3, %v274_v9 }
  0x14   :  { %1088 = vmatpush3.bf16.msra.mxu0 %v1085_v19 }
  0x15   :  { %1090 = vmatprep.subr.bf16.mxu0 %v1089_v24 }
  0x16   :  { %84 = vrot.lane.b32.xlu1 %v61_v11, %s1266_s28  ;;  %82 = vrot.lane.b32.xlu0 %v1420_v12, %s1266_s28 }
  0x18   :  { %1092 = vmatpush3.bf16.msra.mxu0 %v1089_v24 }
  0x1a   :  { %97 = vrot.lane.b32.xlu1 %v1375_v1, %s1267_s23  ;;  %95 = vrot.lane.b32.xlu0 %v1392_v4, %s1267_s23 }
  0x1e   :  { %101 = vrot.lane.b32.xlu1 %v1404_v6, %s1267_s23  ;;  %99 = vrot.lane.b32.xlu0 %v1387_v3, %s1267_s23 }
  0x22   :  { %105 = vrot.lane.b32.xlu1 %v1420_v12, %s1267_s23  ;;  %103 = vrot.lane.b32.xlu0 %v1399_v5, %s1267_s23 }
  0x26   :  { %109 = vrot.lane.b32.xlu1 %v1268_v25, %s1267_s23  ;;  %107 = vrot.lane.b32.xlu0 %v61_v11, %s1267_s23 }
  0x7c   :  { %v75_v26 = vpop.permute.xlu1 %74  ;;  %v71_v27 = vpop.permute.xlu0 %70 }
  0x7d   :  { %v120_v36 = vsel %vm119_vm0, 0.0, %v71_v27  ;;  %v122_v43 = vsel %vm119_vm0, %v1392_v4, %v75_v26 }
  0x80   :  { %v77_v28 = vpop.permute.xlu1 %76  ;;  %v73_v29 = vpop.permute.xlu0 %72 }
  0x81   :  { %v121_v37 = vsel %vm119_vm0, %v1380_v2, %v73_v29  ;;  %v123_v44 = vsel %vm119_vm0, %v1375_v1, %v77_v28 }
  0x84   :  { %v81_v30 = vpop.permute.xlu1 %80  ;;  %v79_v31 = vpop.permute.xlu0 %78 }
  0x85   :  { %v125_v52 = vsel %vm119_vm0, %v1404_v6, %v81_v30  ;;  %v124_v53 = vsel %vm119_vm0, %v1387_v3, %v79_v31 }
  0x88   :  { %v85_v32 = vpop.permute.xlu1 %84  ;;  %v83_v33 = vpop.permute.xlu0 %82 }
  0x89   :  { %v127_v61 = vsel %vm119_vm0, %v1420_v12, %v85_v32  ;;  %v126_v62 = vsel %vm119_vm0, %v1399_v5, %v83_v33  ;;  %v1004_v5 = vld [vmem:[%s1665_s3] ss:$0 sm:$0xff]  ;;  %s1493_s3 = smov 0  }
  0x8c   :  { %v98_v38 = vpop.permute.xlu1 %97  ;;  %v96_v39 = vpop.permute.xlu0 %95 }
  0x8d   :  { %v130_v41 = vsel %vm128_vm1, %v121_v37, %v98_v38  ;;  %v129_v42 = vsel %vm128_vm1, %v120_v36, %v96_v39 }
  0x8e   :  { %v158_v45 = vcombine.low %v129_v42, %v130_v41 }
  0x90   :  { %v102_v46 = vpop.permute.xlu1 %101  ;;  %v100_v47 = vpop.permute.xlu0 %99  ;;  %v166_v56 = vrot.slane %v158_v45, %v165_v48 }
  0x91   :  { %v132_v49 = vsel %vm128_vm1, %v123_v44, %v102_v46  ;;  %v131_v50 = vsel %vm128_vm1, %v122_v43, %v100_v47 }
  0x92   :  { %v159_v51 = vcombine.low %v131_v50, %v132_v49 }
  0x94   :  { %v106_v54 = vpop.permute.xlu1 %105  ;;  %v104_v55 = vpop.permute.xlu0 %103  ;;  %v173_v57 = vrot.slane %v159_v51, %v165_v48 }
  0x95   :  { %v134_v58 = vsel %vm128_vm1, %v125_v52, %v106_v54  ;;  %v133_v59 = vsel %vm128_vm1, %v124_v53, %v104_v55 }
  0x96   :  { %v174_v60 = vcombine.low %v166_v56, %v173_v57  ;;  %v175_v63 = vcombine.low %v133_v59, %v134_v58 }
  0x98   :  { %v110_v0 = vpop.permute.xlu1 %109  ;;  %1054 = vmatprep.mubr.msk.f32.mxu0 %vm192_vm2, %v174_v60  ;;  %v108_v1 = vpop.permute.xlu0 %107  ;;  %v183_v6 = vrot.slane %v175_v63, %v165_v48 }
  0x99   :  { %v136_v2 = vsel %vm128_vm1, %v127_v61, %v110_v0  ;;  %v135_v3 = vsel %vm128_vm1, %v126_v62, %v108_v1 }
  0x9a   :  { %v176_v4 = vcombine.low %v135_v3, %v136_v2 }
  0x9c   :  { %v190_v7 = vrot.slane %v176_v4, %v165_v48 }
  0x9e   :  { %v191_v8 = vcombine.low %v183_v6, %v190_v7 }
  0xa0   :  { %1055 = vmatmul.mubr.msk.f32.vlgmr.msra.gmra.mrb[0].mxu0 %vm192_vm2, %v191_v8 }
 0x173   :  { %v1056_v10 = vpop.f32.mrb[0].mxu0 }
 0x174   :  { %v269_v11 = vadd.f32 %v1056_v10, %v1004_v5  ;;  %v263_v12 = vpop.f32.mrb[1].mxu0 }
 0x175   :  { %v264_v13 = vadd.f32 %v1004_v5, %v263_v12 }
 0x176   :  { %v273_v15 = vmax.f32 %v269_v11, 0.0 }
 0x177   :  { %v272_v14 = vmax.f32 %v264_v13, 0.0 }
 0x179   :  { %1059 = vmatprep.mubr.msk.f32.mxu1 %vm282_vm4, %v272_v14 }
 0x17a   :  { %1060 = vmatmul.mubr.msk.f32.vlgmr.msra.gmra.mrb[0].mxu1 %vm282_vm4, %v273_v15 }
 0x24d   :  { %v1061_v17 = vpop.f32.mrb[0].mxu1 }
 0x24e   :  { %v365_v18 = vadd.f32 %v1061_v17, %v1007_v16  ;;  %v359_v19 = vpop.f32.mrb[1].mxu1 }
 0x24f   :  { %v360_v22 = vadd.f32 %v1007_v16, %v359_v19 }
 0x250   :  { %v387_v23 = vcombine.high %v365_v18, %v365_v18  ;;  %v394_v24 = vrot.slane %v365_v18, %v165_v48 }
 0x251   :  { %v370_v26 = vcombine.high %v360_v22, %v360_v22  ;;  %v377_v27 = vrot.slane %v360_v22, %v165_v48 }
 0x252   :  { %v401_v28 = vrot.slane %v387_v23, %v165_v48  ;;  %v402_v29 = vcombine.high %v394_v24, %v394_v24  ;;  %417 = vst.msk [vmem:[#allocation2 + $0x8] sm:$0x3] %vm412_vm5, %v394_v24 }
 0x253   :  { %v384_v30 = vrot.slane %v370_v26, %v165_v48  ;;  %v385_v31 = vcombine.high %v377_v27, %v377_v27  ;;  %413 = vst.msk [vmem:[#allocation2] sm:$0x3] %vm412_vm5, %v377_v27 }
 0x254   :  { %v403_v32 = vcombine.high %v401_v28, %v401_v28  ;;  %418 = vst.msk [vmem:[#allocation2 + $0xa] sm:$0x3] %vm412_vm5, %v402_v29  ;;  %419 = vst.msk [vmem:[#allocation2 + $0xc] sm:$0x3] %vm412_vm5, %v401_v28 }
 0x255   :  { %v386_v33 = vcombine.high %v384_v30, %v384_v30  ;;  %414 = vst.msk [vmem:[#allocation2 + $0x2] sm:$0x3] %vm412_vm5, %v385_v31  ;;  %415 = vst.msk [vmem:[#allocation2 + $0x4] sm:$0x3] %vm412_vm5, %v384_v30 }
 0x256   :  { %420 = vst.msk [vmem:[#allocation2 + $0xe] sm:$0x3] %vm412_vm5, %v403_v32 }
 0x257   :  { %416 = vst.msk [vmem:[#allocation2 + $0x6] sm:$0x3] %vm412_vm5, %v386_v33 }
 0x258 LB: > { %v1270_v36 = vmov 6   ;;  %v1271_v37 = vmov 7   ;;  %s1011_s6 = sshll.u32 %s1264_s3, 1  ;;  %s1272_s30 = smov 124   ;;  %vm483_vm6 = vcmask 9216   ;;  %s1264_s3 = sphi %s1493_s3, %s435_s3   ;;  %v1260_v35 = vphi %v1258_v35, %v1259_v35   ;;  %v1256_v34 = vphi %v1254_v34, %v1255_v34  }
 0x259   : > { %1138 = vset.pattern.permute.xlu0 %v1270_v36  ;;  %s439_s29 = scalar_lea.vmem [#allocation2], %s1011_s6  ;;  %s1273_s8 = smov 2  }
 0x25a   : > { %443 = vperm.xlu0 %1138, %v1260_v35   ;;  %s1274_s0 = smov 4   ;;  %s1275_s17 = smov 122  }
 0x25b   : > { %s482_s18 = scalar_lea.vmem [#allocation3], %s1011_s6  ;;  %s435_s3 = sadd.s32 1, %s1264_s3  }
 0x25c   : > { %p432_p0 = scmp.ge.s32.totalorder %s435_s3, 8  }
 0x25d   :  { %v1013_v60 = vld [vmem:[%s1669_s7] ss:$0 sm:$0xff] (%p432_p0)  ;;  %1076 = vmatprep.subr.mxu0 (%p432_p0), %v1268_v25  ;;  %v677_v8 = vld [vmem:[%s1671_s9 + $0x8] sm:$0xff] (%p432_p0)  ;;  %v1276_v15 = vmov (%p432_p0), 0.0|0.0   ;;  %v678_v24 = vld [vmem:[%s1671_s9 + $0x10] sm:$0x3] (%p432_p0) }
 0x25e   : > { %1139 = vset.pattern.permute.xlu0 %v1271_v37  ;;  %v440_v40 = vld [vmem:[%s439_s29] sm:$0x3]  ;;  %1093 = vmatprep.subr.bf16.mxu1 (%p432_p0), %v1276_v15  ;;  %vm1277_vm7 = vmmov (%p432_p0), 0   ;;  %vm686_vm8 = vcmask (%p432_p0), 146432   ;;  %v1278_v27 = vmov (%p432_p0), 0   ;;  %vm548_vm9 = vcmask (%p432_p0), 1024  }
 0x25f   : > { %449 = vperm.xlu0 %1139, %v1260_v35   ;;  %v676_v7 = vld [vmem:[%s1671_s9] sm:$0xff] (%p432_p0)  ;;  %1068 = vmatprep.mubr.msk.f32.mxu1 (%p432_p0), %vm1277_vm7, %v1268_v25  ;;  %s1281_s3 = smov (%p432_p0), [#allocation7]   ;;  %s1282_s29 = smov (%p432_p0), [#allocation9]  }
 0x260   :  { %v1094_v12 = vpack.c.bf16 (%p432_p0), %v677_v8, %v676_v7  ;;  %v675_v26 = vld [vmem:[%s1663_s1] sm:$0x3] (%p432_p0)  ;;  %1078 = vmatprep.mubr.msk.f32.mxu0 (%p432_p0), %vm1277_vm7, %v1268_v25  ;;  %1149 = vset.pattern.permute.xlu1 (%p432_p0), %v1278_v27  ;;  %s964_s6 = sshll.u32 (%p432_p0), %s1281_s3, 4  ;;  %s965_s6 = int_to_ptr.vmem [resolvable:$true] %s964_s6 }
 0x261   :  { %v1014_v32 = vld [vmem:[#allocation4] ss:$0 sm:$0xff] (%p432_p0)  ;;  %p1177_p2 = scmp.lt.s32.totalorder (%p432_p0), %s965_s6, %s965_s6 }
 0x262   :  { %1095 = vmatpush3.bf16.msra.mxu1 (%p432_p0), %v1094_v12 }
 0x263   :  { %1066 = vmatprep.subr.mxu1 (%p432_p0), %v1268_v25  ;;  %1148 = vset.pattern.permute.xlu0 (%p432_p0), %v1278_v27 }
 0x266   :  { %1067 = vmatpush3.msk.msra.mxu1 (%p432_p0), %vm289_vm3, %v678_v24 }
 0x267   :  { %1069 = vmatmul.mubr.msk.f32.vlgmr.msra.gmra.mrb[2].mxu1 (%p432_p0), %vm686_vm8, %v675_v26  ;;  %1071 = vmatprep.subr.mxu1 (%p432_p0), %v1268_v25 }
 0x268   :  { %1073 = vmatprep.mubr.msk.f32.mxu1 (%p432_p0), %vm1277_vm7, %v1268_v25 }
 0x2d9   : > { %v444_v38 = vpop.permute.xlu0 %443 }
 0x2da   : > { %v446_v39 = vmul.f32 %v444_v38, %v1432_v20 }
 0x2dc   : > { %v447_v42 = vadd.f32 %v446_v39, %v440_v40 }
 0x2de   : > { %v450_v41 = vpop.permute.xlu0 %449 }
 0x2df   : > { %v452_v43 = vmul.f32 %v450_v41, %v1434_v21 }
 0x2e1   : > { %v453_v44 = vadd.f32 %v452_v43, %v447_v42 }
 0x2e3   : > { %1140 = vtanh.f32 %v453_v44  ;;  %v1012_v46 = vmul.f32 -1.442695, %v453_v44 }
 0x2e5   : > { %1142 = vpow2.f32 %v1012_v46 }
 0x2ed   : > { %v1141_v45 = vpop.eup %1140 }
 0x2ee   : > { %463 = vrot.lane.b32.xlu1 %v1141_v45, %s1272_s30  ;;  %s974_s30 = sshll.u32 (%p432_p0), %s1282_s29, 4  ;;  %s975_s30 = int_to_ptr.vmem [resolvable:$true] %s974_s30 }
 0x2ef   : > { %v1143_v47 = vpop.eup %1142 }
 0x2f0   : > { %v457_v48 = vadd.f32 1.0, %v1143_v47 }
 0x2f2   : > { %1144 = vrcp.f32 %v457_v48 }
 0x2fc   : > { %v1145_v49 = vpop.eup %1144 }
 0x2fd   : > { %v461_v52 = vmul.f32 %v1256_v34, %v1145_v49 }
 0x360   : > { %v464_v50 = vpop.permute.xlu1 %463 }
 0x361   : > { %v466_v51 = vmul.f32 %v1145_v49, %v464_v50 }
 0x363   : > { %468 = vrot.lane.b32.xlu1 %v466_v51, %s1273_s8  ;;  %s1172_s8 = scalar_lea.vmem (%p432_p0), %s965_s6, 32 }
 0x364   :  { %p1173_p1 = scmp.ne.s32.totalorder (%p432_p0), %s965_s6, %s1172_s8  ;;  %p1178_p3 = scmp.lt.s32.totalorder (%p432_p0), %s1172_s8, %s1172_s8 }
 0x366   :  { %p1179_p4 = por (%p432_p0), %p1178_p3, %p1177_p2 }
 0x368   :  { %p1180_p5 = pnand (%p432_p0), %p1179_p4, %p1173_p1 }
 0x3d5   : > { %v469_v53 = vpop.permute.xlu1 %468 }
 0x3d6   : > { %v1503_v34 = vadd.f32 %v469_v53, %v461_v52  }
 0x3d8   : > { %v1682_v54 = vmov %v1503_v34 }
 0x3d9   : > { %1146 = vtanh.f32 %v1682_v54  ;;  %v1255_v34 = vmov %v1682_v54  }
 0x3e3   : > { %v1147_v55 = vpop.eup %1146 }
 0x3e4   : > { %474 = vrot.lane.b32.xlu1 %v1147_v55, %s1274_s0 }
 0x456   : > { %v475_v56 = vpop.permute.xlu1 %474 }
 0x457   : > { %v1506_v35 = vmul.f32 %v1145_v49, %v475_v56  }
 0x459   : > { %v1683_v57 = vmov %v1506_v35 }
 0x45a   : > { %479 = vrot.lane.b32.xlu0 %v1683_v57, %s1275_s17  ;;  %v1259_v35 = vmov %v1683_v57  }
 0x4c7   :  { %434 = sbr.rel (!%p432_p0) target bundleno = 600 (0x258), region = 101 }
 0x4cc   : > { %v480_v58 = vpop.permute.xlu0 %479 }
 0x4cd   : > { %484 = vst.msk [vmem:[%s482_s18] sm:$0x3] %vm483_vm6, %v480_v58 }
 0x4d4   :  { %v1517_v59 = vld [vmem:[#allocation3 + $0x4] sm:$0x3]  ;;  %v1522_v61 = vld [vmem:[#allocation3] sm:$0x3]  ;;  %v1527_v0 = vld [vmem:[#allocation3 + $0x6] sm:$0x3] }
 0x4d5   :  { %v502_v62 = vmul.f32 %v1013_v60, %v1517_v59  ;;  %v500_v63 = vmul.f32 %v1013_v60, %v1522_v61  ;;  %v1529_v1 = vld [vmem:[#allocation3 + $0x2] sm:$0x3]  ;;  %v1531_v2 = vld [vmem:[#allocation3 + $0xa] sm:$0x3]  ;;  %v503_v20 = vmul.f32 %v1013_v60, %v1527_v0  ;;  %v1535_v3 = vld [vmem:[#allocation3 + $0x8] sm:$0x3] }
 0x4d6   :  { %v501_v21 = vmul.f32 %v1013_v60, %v1529_v1  ;;  %v505_v9 = vmul.f32 %v1013_v60, %v1531_v2  ;;  %v504_v5 = vmul.f32 %v1013_v60, %v1535_v3  ;;  %v1549_v13 = vld [vmem:[#allocation3 + $0xe] sm:$0x3]  ;;  %v1551_v14 = vld [vmem:[#allocation3 + $0xc] sm:$0x3] }
 0x4d7   :  { %v515_v4 = vsel %vm483_vm6, %v502_v62, 0.0  ;;  %v509_v6 = vsel %vm483_vm6, %v500_v63, 0.0  ;;  %v518_v10 = vsel %vm483_vm6, %v503_v20, 0.0  ;;  %v507_v18 = vmul.f32 %v1013_v60, %v1549_v13 }
 0x4d8   :  { %516 = vadd.xlane.f32.xlu1 %v515_v4  ;;  %510 = vadd.xlane.f32.xlu0 %v509_v6  ;;  %v512_v11 = vsel %vm483_vm6, %v501_v21, 0.0  ;;  %v524_v16 = vsel %vm483_vm6, %v505_v9, 0.0  ;;  %v521_v17 = vsel %vm483_vm6, %v504_v5, 0.0  ;;  %v506_v19 = vmul.f32 %v1013_v60, %v1551_v14 }
 0x4d9   :  { %v530_v22 = vsel %vm483_vm6, %v507_v18, 0.0 }
 0x4da   :  { %v527_v23 = vsel %vm483_vm6, %v506_v19, 0.0 }
 0x4dc   :  { %519 = vadd.xlane.f32.xlu1 %v518_v10  ;;  %513 = vadd.xlane.f32.xlu0 %v512_v11 }
 0x4e0   :  { %525 = vadd.xlane.f32.xlu1 %v524_v16  ;;  %522 = vadd.xlane.f32.xlu0 %v521_v17 }
 0x4e4   :  { %531 = vadd.xlane.f32.xlu1 %v530_v22  ;;  %528 = vadd.xlane.f32.xlu0 %v527_v23 }
 0x565   :  { %v517_v28 = vpop.xlane.xlu1 %516  ;;  %v511_v29 = vpop.xlane.xlu0 %510 }
 0x566   :  { %v540_v35 = vadd.f32 %v1014_v32, %v511_v29  ;;  %v542_v39 = vadd.f32 %v1014_v32, %v517_v28 }
 0x568   :  { %v549_v44 = vsel %vm548_vm9, %v540_v35, -inf  ;;  %v551_v50 = vsel %vm548_vm9, %v542_v39, -inf }
 0x569   :  { %v520_v30 = vpop.xlane.xlu1 %519  ;;  %v514_v31 = vpop.xlane.xlu0 %513 }
 0x56a   :  { %v541_v36 = vadd.f32 %v1014_v32, %v514_v31  ;;  %v543_v40 = vadd.f32 %v1014_v32, %v520_v30 }
 0x56c   :  { %v550_v45 = vsel %vm548_vm9, %v541_v36, -inf  ;;  %v552_v51 = vsel %vm548_vm9, %v543_v40, -inf }
 0x56d   :  { %v526_v33 = vpop.xlane.xlu1 %525  ;;  %v523_v34 = vpop.xlane.xlu0 %522 }
 0x56e   :  { %v545_v37 = vadd.f32 %v1014_v32, %v526_v33  ;;  %v544_v38 = vadd.f32 %v1014_v32, %v523_v34 }
 0x570   :  { %v555_v41 = vsel %vm548_vm9, %v545_v37, -inf  ;;  %v553_v25 = vsel %vm548_vm9, %v544_v38, -inf }
 0x571   :  { %v532_v42 = vpop.xlane.xlu1 %531  ;;  %v529_v43 = vpop.xlane.xlu0 %528  ;;  %v556_v48 = vmax.f32 %v550_v45, %v555_v41  ;;  %v554_v49 = vmax.f32 %v549_v44, %v553_v25 }
 0x572   :  { %v547_v46 = vadd.f32 %v1014_v32, %v532_v42  ;;  %v546_v47 = vadd.f32 %v1014_v32, %v529_v43 }
 0x573   :  { %v561_v58 = vmax.f32 %v554_v49, %v556_v48 }
 0x574   :  { %v559_v52 = vsel %vm548_vm9, %v547_v46, -inf  ;;  %v557_v53 = vsel %vm548_vm9, %v546_v47, -inf }
 0x575   :  { %v560_v55 = vmax.f32 %v552_v51, %v559_v52  ;;  %v558_v56 = vmax.f32 %v551_v50, %v557_v53  ;;  %v1015_v53 = vld [vmem:[%s1672_s10] ss:$0 sm:$0xff] }
 0x577   :  { %v562_v60 = vmax.f32 %v558_v56, %v560_v55  ;;  %v759_v55 = vpop.f32.mrb[2].mxu1 }
 0x578   :  { %v760_v56 = vadd.f32 %v1015_v53, %v759_v55 }
 0x579   :  { %v563_v62 = vmax.f32 %v561_v58, %v562_v60  ;;  %v1070_v58 = vpop.f32.mrb[3].mxu1 }
 0x57a   :  { %v763_v60 = vmax.f32 %v760_v56, 0.0 }
 0x57b   :  { %v566_v63 = vsub.f32 %v542_v39, %v563_v62  ;;  %v564_v20 = vsub.f32 %v540_v35, %v563_v62  ;;  %v565_v21 = vsub.f32 %v541_v36, %v563_v62  ;;  %v567_v4 = vsub.f32 %v543_v40, %v563_v62 }
 0x57c   :  { %v568_v8 = vsub.f32 %v544_v38, %v563_v62  ;;  %v569_v5 = vsub.f32 %v545_v37, %v563_v62  ;;  %v570_v11 = vsub.f32 %v546_v47, %v563_v62  ;;  %v571_v15 = vsub.f32 %v547_v46, %v563_v62  ;;  %v765_v62 = vld [vmem:[%s1674_s12] sm:$0x3]  ;;  %s1279_s12 = smov 126  }
 0x57d   :  { %v576_v6 = vmul.f32 1.442695, %v566_v63  ;;  %v572_v7 = vmul.f32 1.442695, %v564_v20  ;;  %v574_v9 = vmul.f32 1.442695, %v565_v21  ;;  %1072 = vmatpush3.msk.msra.mxu1 %vm289_vm3, %v765_v62 }
 0x57e   :  { %v578_v10 = vmul.f32 1.442695, %v567_v4  ;;  %v580_v12 = vmul.f32 1.442695, %v568_v8  ;;  %v582_v16 = vmul.f32 1.442695, %v569_v5  ;;  %1074 = vmatmul.mubr.msk.f32.vlgmr.msra.gmra.mrb[4].mxu1 %vm282_vm4, %v763_v60 }
 0x57f   :  { %1150 = vpow2.f32 %v576_v6  ;;  %v584_v17 = vmul.f32 1.442695, %v570_v11  ;;  %v586_v18 = vmul.f32 1.442695, %v571_v15  ;;  %v764_v63 = vld [vmem:[%s1673_s11] sm:$0x3] }
 0x580   :  { %1152 = vpow2.f32 %v572_v7  ;;  %1077 = vmatpush3.msk.msra.mxu0 %vm289_vm3, %v764_v63 }
 0x581   :  { %1154 = vpow2.f32 %v574_v9 }
 0x582   :  { %1156 = vpow2.f32 %v578_v10 }
 0x583   :  { %1158 = vpow2.f32 %v580_v12 }
 0x584   :  { %1160 = vpow2.f32 %v582_v16 }
 0x585   :  { %1162 = vpow2.f32 %v584_v17 }
 0x586   :  { %1164 = vpow2.f32 %v586_v18 }
 0x589   :  { %v1151_v19 = vpop.eup %1150 }
 0x58a   :  { %v1153_v22 = vpop.eup %1152  ;;  %v591_v29 = vsel %vm548_vm9, %v1151_v19, 0.0 }
 0x58b   :  { %v1155_v23 = vpop.eup %1154  ;;  %v588_v24 = vsel %vm548_vm9, %v1153_v22, 0.0 }
 0x58c   :  { %v589_v26 = vsel %vm548_vm9, %v1155_v23, 0.0  ;;  %v1157_v27 = vpop.eup %1156 }
 0x58d   :  { %v590_v28 = vadd.f32 %v589_v26, %v588_v24  ;;  %v1159_v30 = vpop.eup %1158  ;;  %v593_v32 = vsel %vm548_vm9, %v1157_v27, 0.0 }
 0x58e   :  { %v1161_v33 = vpop.eup %1160  ;;  %v595_v35 = vsel %vm548_vm9, %v1159_v30, 0.0 }
 0x58f   :  { %v592_v31 = vadd.f32 %v591_v29, %v590_v28  ;;  %v1163_v36 = vpop.eup %1162  ;;  %v597_v38 = vsel %vm548_vm9, %v1161_v33, 0.0 }
 0x590   :  { %v1165_v39 = vpop.eup %1164  ;;  %v599_v41 = vsel %vm548_vm9, %v1163_v36, 0.0 }
 0x591   :  { %v594_v34 = vadd.f32 %v593_v32, %v592_v31  ;;  %v601_v42 = vsel %vm548_vm9, %v1165_v39, 0.0 }
 0x593   :  { %v596_v37 = vadd.f32 %v595_v35, %v594_v34 }
 0x595   :  { %v598_v40 = vadd.f32 %v597_v38, %v596_v37 }
 0x597   :  { %v600_v25 = vadd.f32 %v599_v41, %v598_v40 }
 0x599   :  { %v602_v43 = vadd.f32 %v601_v42, %v600_v25 }
 0x59b   :  { %1166 = vrcp.f32 %v602_v43 }
 0x5a5   :  { %v1167_v44 = vpop.eup %1166 }
 0x5a6   :  { %v605_v45 = vmul.f32 %v1167_v44, %v1155_v23  ;;  %v604_v46 = vmul.f32 %v1167_v44, %v1153_v22  ;;  %v606_v47 = vmul.f32 %v1167_v44, %v1151_v19  ;;  %v607_v48 = vmul.f32 %v1167_v44, %v1157_v27 }
 0x5a7   :  { %v608_v49 = vmul.f32 %v1167_v44, %v1159_v30  ;;  %v609_v50 = vmul.f32 %v1167_v44, %v1161_v33  ;;  %v610_v51 = vmul.f32 %v1167_v44, %v1163_v36  ;;  %v611_v52 = vmul.f32 %v1167_v44, %v1165_v39 }
 0x5a8   :  { %619 = vperm.xlu1 %1149, %v605_v45   ;;  %614 = vperm.xlu0 %1148, %v604_v46  }
 0x5ac   :  { %624 = vperm.xlu1 %1149, %v606_v47  }
 0x5b0   :  { %629 = vperm.xlu1 %1149, %v607_v48  }
 0x5b4   :  { %634 = vperm.xlu1 %1149, %v608_v49  }
 0x5b8   :  { %639 = vperm.xlu1 %1149, %v609_v50  }
 0x5bc   :  { %644 = vperm.xlu1 %1149, %v610_v51  }
 0x5c0   :  { %649 = vperm.xlu1 %1149, %v611_v52  }
 0x627   :  { %v620_v20 = vpop.permute.xlu1 %619  ;;  %v615_v4 = vpop.permute.xlu0 %614 }
 0x628   :  { %v653_v7 = vmul.f32 %v620_v20, %v1529_v1  ;;  %v652_v8 = vmul.f32 %v615_v4, %v1522_v61 }
 0x62a   :  { %v661_v10 = vsel %vm483_vm6, %v653_v7, 0.0  ;;  %v660_v11 = vsel %vm483_vm6, %v652_v8, 0.0 }
 0x62b   :  { %v625_v21 = vpop.permute.xlu1 %624  ;;  %v662_v17 = vadd.f32 %v661_v10, %v660_v11 }
 0x62c   :  { %v654_v9 = vmul.f32 %v625_v21, %v1517_v59 }
 0x62e   :  { %v663_v15 = vsel %vm483_vm6, %v654_v9, 0.0 }
 0x62f   :  { %v630_v6 = vpop.permute.xlu1 %629  ;;  %v664_v61 = vadd.f32 %v663_v15, %v662_v17 }
 0x630   :  { %v655_v12 = vmul.f32 %v630_v6, %v1527_v0 }
 0x632   :  { %v665_v19 = vsel %vm483_vm6, %v655_v12, 0.0 }
 0x633   :  { %v635_v5 = vpop.permute.xlu1 %634  ;;  %v666_v22 = vadd.f32 %v665_v19, %v664_v61 }
 0x634   :  { %v656_v16 = vmul.f32 %v635_v5, %v1535_v3 }
 0x636   :  { %v667_v59 = vsel %vm483_vm6, %v656_v16, 0.0 }
 0x637   :  { %v640_v18 = vpop.permute.xlu1 %639  ;;  %v668_v0 = vadd.f32 %v667_v59, %v666_v22 }
 0x638   :  { %v657_v1 = vmul.f32 %v640_v18, %v1531_v2 }
 0x63a   :  { %v669_v24 = vsel %vm483_vm6, %v657_v1, 0.0 }
 0x63b   :  { %v645_v23 = vpop.permute.xlu1 %644  ;;  %v670_v28 = vadd.f32 %v669_v24, %v668_v0 }
 0x63c   :  { %v658_v26 = vmul.f32 %v645_v23, %v1551_v14  ;;  %v1022_v14 = vld [vmem:[%s1675_s13] ss:$0 sm:$0xff]  ;;  %s1280_s13 = smov 122  }
 0x63e   :  { %v671_v27 = vsel %vm483_vm6, %v658_v26, 0.0 }
 0x63f   :  { %v650_v3 = vpop.permute.xlu1 %649  ;;  %v672_v30 = vadd.f32 %v671_v27, %v670_v28 }
 0x640   :  { %v659_v29 = vmul.f32 %v650_v3, %v1549_v13 }
 0x642   :  { %v673_v31 = vsel %vm483_vm6, %v659_v29, 0.0 }
 0x643   :  { %v674_v2 = vadd.f32 %v673_v31, %v672_v30 }
 0x645   :  { %1079 = vmatmul.mubr.msk.f32.vlgmr.msra.gmra.mrb[2].mxu0 %vm282_vm4, %v674_v2 }
 0x651   :  { %v838_v32 = vpop.f32.mrb[4].mxu1 }
 0x652   :  { %v1075_v33 = vpop.f32.mrb[5].mxu1 }
 0x718   :  { %v914_v34 = vpop.f32.mrb[2].mxu0 }
 0x719   :  { %v915_v35 = vadd.f32 %v914_v34, %v838_v32  ;;  %v1080_v36 = vpop.f32.mrb[3].mxu0 }
 0x71b   :  { %v925_v37 = vadd.f32 %v1022_v14, %v915_v35 }
 0x71d   :  { %v926_v38 = vsel %vm483_vm6, %v925_v37, -inf }
 0x71e   :  { %927 = vmax.xlane.f32.xlu1 %v926_v38 }
 0x72f   :  { %944 = vrot.lane.b32.xlu1 %v1682_v54, %s1279_s12 }
 0x7ab   :  { %v928_v13 = vpop.xlane.xlu1 %927 }
 0x7ac   :  { %v929_v39 = vsub.f32 %v925_v37, %v928_v13 }
 0x7ae   :  { %v930_v40 = vmul.f32 1.442695, %v929_v39 }
 0x7af   :  { %v945_v42 = vpop.permute.xlu1 %944 }
 0x7b0   :  { %1168 = vpow2.f32 %v930_v40  ;;  %947 = vst.msk [vmem:[#allocation9] sm:$0x3] %vm483_vm6, %v945_v42 }
 0x7ba   :  { %v1169_v41 = vpop.eup %1168 }
 0x7bb   :  { %v932_v25 = vsel %vm483_vm6, %v1169_v41, 0.0 }
 0x7bc   :  { %933 = vadd.xlane.f32.xlu0 %v932_v25 }
 0x7d2   :  { %939 = vrot.lane.b32.xlu0 %v1683_v57, %s1280_s13 }
 0x849   :  { %v934_v43 = vpop.xlane.xlu0 %933 }
 0x84a   :  { %1170 = vrcp.f32 %v934_v43 }
 0x84d   :  { %v940_v54 = vpop.permute.xlu0 %939 }
 0x84e   :  { %942 = vst.msk [vmem:[#allocation7] sm:$0x3] %vm483_vm6, %v940_v54 }
 0x84f   :  { %1183 = shalt.err (!%p1180_p5)
}
 0x850   :  { %s1184_s18 = scalar_lea.hbm %s1677_s15, 32 }
 0x851   :  { %p1185_p6 = scmp.ne.s32.totalorder %s1677_s15, %s1184_s18  ;;  %p1188_p7 = scmp.lt.u32.totalorder %s1184_s18, %s1677_s15 }
 0x853   :  { %p1190_p8 = pnand %p1188_p7, %p1185_p6 }
 0x855   :  { %1193 = shalt.err (!%p1190_p8)
}
 0x856   :  { %967 = dma.vmem_to_hbm [thread:$0]  %s965_s6, 32, %s1677_s15, [#allocation8]  }
 0x857   :  { %s1194_s22 = scalar_lea.vmem %s975_s30, 32  ;;  %p1199_p10 = scmp.lt.s32.totalorder %s975_s30, %s975_s30 }
 0x858   :  { %p1195_p9 = scmp.ne.s32.totalorder %s975_s30, %s1194_s22  ;;  %p1200_p11 = scmp.lt.s32.totalorder %s1194_s22, %s1194_s22 }
 0x85a   :  { %p1201_p12 = por %p1200_p11, %p1199_p10 }
 0x85c   :  { %p1202_p13 = pnand %p1201_p12, %p1195_p9 }
 0x85e   :  { %1205 = shalt.err (!%p1202_p13)
}
 0x85f   :  { %s1206_s28 = scalar_lea.hbm %s1678_s16, 32 }
 0x860   :  { %p1207_p0 = scmp.ne.s32.totalorder %s1678_s16, %s1206_s28  ;;  %p1210_p1 = scmp.lt.u32.totalorder %s1206_s28, %s1678_s16 }
 0x862   :  { %p1212_p2 = pnand %p1210_p1, %p1207_p0 }
 0x864   :  { %1215 = shalt.err (!%p1212_p2)
}
 0x865   :  { %977 = dma.vmem_to_hbm [thread:$0]  %s975_s30, 32, %s1678_s16, [#allocation8]   ;;  %v1171_v57 = vpop.eup %1170 }
 0x866   :  { %s1283_s27 = smov [#allocation5]   ;;  %v936_v44 = vmul.f32 %v1171_v57, %v1169_v41 }
 0x867   :  { %s954_s10 = sshll.u32 %s1283_s27, 4  ;;  %s955_s10 = int_to_ptr.vmem [resolvable:$true] %s954_s10 }
 0x868   :  { %937 = vst.msk [vmem:[#allocation5] sm:$0x3] %vm483_vm6, %v936_v44  ;;  %s1216_s11 = scalar_lea.vmem %s955_s10, 32  ;;  %p1221_p4 = scmp.lt.s32.totalorder %s955_s10, %s955_s10 }
 0x869   :  { %p1217_p3 = scmp.ne.s32.totalorder %s955_s10, %s1216_s11  ;;  %p1222_p5 = scmp.lt.s32.totalorder %s1216_s11, %s1216_s11 }
 0x86b   :  { %p1223_p6 = por %p1222_p5, %p1221_p4 }
 0x86d   :  { %p1224_p7 = pnand %p1223_p6, %p1217_p3 }
 0x86f   :  { %1227 = shalt.err (!%p1224_p7)
}
 0x870   :  { %s1228_s3 = scalar_lea.hbm %s1676_s14, 32 }
 0x871   :  { %p1229_p8 = scmp.ne.s32.totalorder %s1676_s14, %s1228_s3  ;;  %p1232_p9 = scmp.lt.u32.totalorder %s1228_s3, %s1676_s14 }
 0x873   :  { %p1234_p10 = pnand %p1232_p9, %p1229_p8 }
 0x875   :  { %1237 = shalt.err (!%p1234_p10)
}
 0x876   :  { %957 = dma.vmem_to_hbm [thread:$0]  %s955_s10, 32, %s1676_s14, [#allocation6]  }
 0x877   :  { %1250 = dma.done.wait [#allocation6], 32  }
 0x878   :  { %1251 = vsyncadd [#allocation6], 4294967264 }
 0x879   :  { %1252 = dma.done.wait [#allocation8], 64  }
 0x87a   :  { %1253 = vsyncadd [#allocation8], 4294967232 }
 0x87b   :  { %987 = vsyncpa [#allocation6], 1 }
 0x87c   :  { %988 = vsyncpa [#allocation8], 1 }

</bundles_post_ra>
